<compile_context>
chip_gen: v5e
topology: v5e:2x2
jax: 0.10.0
libtpu: 0.0.40
codegen_flags: <defaults>
</compile_context>

<pallas_src>
import jax
import jax.numpy as jnp
from jax.experimental import pallas as pl
from jax.experimental.pallas import tpu as pltpu

_LANE = 128
_MAX_COLS = 16384                       # wide lane dim -> long unmasked vst streams
_TARGET_BLOCK_BYTES = 2 * 1024 * 1024   # ~2 MiB/block; 2 arrays x 2 buffers ~ 8 MiB VMEM


def _swish_kernel(x_ref, o_ref):
    x = x_ref[...]
    # bf16 math is native on v6e/v7x VPU/EUP (halves vreg/VMEM pressure);
    # everything else is computed in f32.
    xf = x if x.dtype == jnp.bfloat16 else x.astype(jnp.float32)
    sig = pl.reciprocal(1.0 + jnp.exp(-xf), approx=False)
    o_ref[...] = (xf * sig).astype(o_ref.dtype)


def _pick_cols(n: int) -> int:
    """Largest multiple of 128 (capped) that divides n, for a lane-dense slab."""
    cap = (min(_MAX_COLS, n) // _LANE) * _LANE
    for cols in range(cap, 0, -_LANE):
        if n % cols == 0:
            return cols
    return 0  # n not divisible by 128 -> caller falls back to padding


def swish(x: jax.Array) -> jax.Array:
    """Elementwise Swish: x * sigmoid(x). Works for any input shape/dtype."""
    orig_shape = x.shape
    orig_dtype = x.dtype
    n = x.size
    itemsize = jnp.dtype(orig_dtype).itemsize

    cols = _pick_cols(n)
    if cols:
        # Fast path: pure reshape (no copy) into a lane-dense 2D slab.
        pad = 0
        x2d = jnp.reshape(x, (n // cols, cols))
    else:
        # Rare fallback (size not a multiple of 128): pad the flat tail.
        cols = 1024 if n >= 1024 else _LANE
        pad = (-n) % cols
        x_flat = jnp.reshape(x, (-1,))
        x_flat = jnp.concatenate([x_flat, jnp.zeros((pad,), dtype=orig_dtype)])
        x2d = jnp.reshape(x_flat, (-1, cols))

    rows = x2d.shape[0]

    # ~2 MiB blocks: big enough to amortize the ~0.35 us/step grid overhead,
    # small enough to stay well inside scoped VMEM on v5e/v6e/v7x.
    rows_for_target = max(1, _TARGET_BLOCK_BYTES // (cols * itemsize))
    if rows <= rows_for_target:
        block_rows = rows                     # single block along rows (== full dim)
    else:
        block_rows = max(8, (rows_for_target // 8) * 8)
    grid = (pl.cdiv(rows, block_rows),)       # partial last block handled by Pallas

    out2d = pl.pallas_call(
        _swish_kernel,
        out_shape=jax.ShapeDtypeStruct((rows, cols), orig_dtype),
        grid_spec=pltpu.PrefetchScalarGridSpec(
            num_scalar_prefetch=0,
            grid=grid,
            in_specs=[pl.BlockSpec((block_rows, cols), lambda i: (i, 0))],
            out_specs=pl.BlockSpec((block_rows, cols), lambda i: (i, 0)),
        ),
        compiler_params=pltpu.CompilerParams(
            dimension_semantics=("parallel",),        # v7x: shard steps over 2 TCs
            vmem_limit_bytes=32 * 1024 * 1024,        # headroom on v5e (16 MiB default)
        ),
        cost_estimate=pl.CostEstimate(
            flops=5 * n,
            transcendentals=n,
            bytes_accessed=2 * n * itemsize,
        ),
    )(x2d)

    if pad:
        out_flat = jnp.reshape(out2d, (-1,))[:n]
        return jnp.reshape(out_flat, orig_shape)
    return jnp.reshape(out2d, orig_shape)


if __name__ == "__main__":
    key = jax.random.PRNGKey(0)

    # Main case: small NCHW input consistent with the head's usage.
    x = jax.random.normal(key, (2, 4, 16, 16), dtype=jnp.float32)
    out = jax.block_until_ready(swish(x))
    ref = x * jax.nn.sigmoid(x)
    assert out.shape == x.shape and out.dtype == x.dtype
    assert jnp.allclose(out, ref, atol=1e-6, rtol=1e-6)

    # Fallback path check: element count not divisible by 128.
    x2 = jax.random.normal(jax.random.PRNGKey(1), (3, 5, 7), dtype=jnp.float32)
    out2 = jax.block_until_ready(swish(x2))
    ref2 = x2 * jax.nn.sigmoid(x2)
    assert out2.shape == x2.shape and out2.dtype == x2.dtype
    assert jnp.allclose(out2, ref2, atol=1e-6, rtol=1e-6)

    print("KERNEL_OK")
</pallas_src>

<mosaic_0001>
module attributes {stable_mosaic.version = 11 : i64} {
  func.func @_swish_kernel(%arg0: i32, %arg1: memref<1x2048xf32, #tpu.memory_space<vmem>>, %arg2: memref<1x2048xf32, #tpu.memory_space<vmem>>) attributes {dimension_semantics = [#tpu.dimension_semantics<parallel>], iteration_bounds = array<i64: 1>, scalar_prefetch = 0 : i64, scratch_operands = 0 : i64, tpu.core_type = #tpu.core_type<tc>, window_params = [{transform_indices = @transform_0, window_bounds = array<i64: 1, 2048>}, {transform_indices = @transform_1, window_bounds = array<i64: 1, 2048>}]} {
    %c0 = arith.constant 0 : index
    %c0_0 = arith.constant 0 : index
    %0 = vector.load %arg1[%c0, %c0_0] : memref<1x2048xf32, #tpu.memory_space<vmem>>, vector<1x2048xf32>
    %cst = arith.constant 0.000000e+00 : f32
    %1 = vector.broadcast %cst : f32 to vector<1x2048xf32>
    %2 = arith.subf %1, %0 : vector<1x2048xf32>
    %3 = math.exp %2 : vector<1x2048xf32>
    %cst_1 = arith.constant 1.000000e+00 : f32
    %4 = vector.broadcast %cst_1 : f32 to vector<1x2048xf32>
    %5 = arith.addf %4, %3 : vector<1x2048xf32>
    %6 = tpu.reciprocal %5 : vector<1x2048xf32> -> vector<1x2048xf32>
    %7 = arith.mulf %0, %6 : vector<1x2048xf32>
    %c0_2 = arith.constant 0 : index
    %c0_3 = arith.constant 0 : index
    %8 = vector.load %arg2[%c0_2, %c0_3] : memref<1x2048xf32, #tpu.memory_space<vmem>>, vector<1x2048xf32>
    tpu.vector_store %arg2[%c0_2, %c0_3], %7 {strides = array<i32>} : memref<1x2048xf32, #tpu.memory_space<vmem>>, vector<1x2048xf32>,
    return
  }
  func.func @transform_0(%arg0: i32) -> (i32, i32) {
    %c0_i32 = arith.constant 0 : i32
    %c0_i32_0 = arith.constant 0 : i32
    return %arg0, %c0_i32 : i32, i32
  }
  func.func @transform_1(%arg0: i32) -> (i32, i32) {
    %c0_i32 = arith.constant 0 : i32
    %c0_i32_0 = arith.constant 0 : i32
    return %arg0, %c0_i32 : i32, i32
  }
}

</mosaic_0001>

<bundles_post_ra>
// kernel: tpu_custom_call.1
= control target key start
LH: loop header
LB: loop body
LE: loop exit
PB: predicated region body
PF: predicated region fallthrough
CT: control target
= control target key end

     0   :  { %6 = vsyncpa [#allocation3], 0  ;;  %s162_s0 = inlined_call_operand.hbm [shape: f32[1,2048], index: 0, kind: input, shape index: {}]   ;;  %s163_s1 = inlined_call_operand.hbm [shape: f32[1,2048], index: 1, kind: output, shape index: {}]  }
   0x1   :  { %7 = vsyncpa [#allocation4], 0  ;;  %s13_s8 = sshll.u32 %s162_s0, 4  ;;  %s144_s9 = smov [#allocation2]   ;;  %s14_s8 = int_to_ptr.hbm [resolvable:$true] %s13_s8 }
   0x2   :  { %s15_s10 = sshll.u32 %s144_s9, 4  ;;  %s16_s10 = int_to_ptr.vmem [resolvable:$true] %s15_s10 }
   0x3   :  { %18 = dma.hbm_to_vmem [thread:$0]  %s14_s8, 256, %s16_s10, [#allocation3]  }
   0x4   :  { %140 = dma.done.wait [#allocation3], 256  }
   0x5   :  { %141 = vsyncadd [#allocation3], 4294967040  ;;  %v23_v0 = vld [vmem:[#allocation2] sm:$0xff]  ;;  %v24_v1 = vld [vmem:[#allocation2 + $0x8] sm:$0xff]  ;;  %s145_s0 = smov [#allocation5]   ;;  %s72_s14 = sshll.u32 %s163_s1, 4  ;;  %s73_s14 = int_to_ptr.hbm [resolvable:$true] %s72_s14 }
   0x6   :  { %v25_v2 = vsub.f32 0.0, %v23_v0  ;;  %v26_v3 = vsub.f32 0.0, %v24_v1  ;;  %s70_s11 = sshll.u32 %s145_s0, 4  ;;  %s71_s11 = int_to_ptr.vmem [resolvable:$true] %s70_s11 }
   0x8   :  { %v27_v4 = vmul.f32 1.442695, %v25_v2  ;;  %v29_v5 = vmul.f32 1.442695, %v26_v3 }
   0xa   :  { %84 = vpow2.f32 %v27_v4 }
   0xb   :  { %86 = vpow2.f32 %v29_v5 }
  0x10   :  { %v85_v6 = vpop.eup %84 }
  0x11   :  { %v87_v7 = vpop.eup %86  ;;  %v31_v8 = vadd.f32 1.0, %v85_v6 }
  0x12   :  { %v32_v9 = vadd.f32 1.0, %v87_v7 }
  0x13   :  { %88 = vrcp.f32 %v31_v8  ;;  %vm38_vm0 = vweird.f32 %v31_v8  ;;  %v44_v13 = vand.u32 2147483648, %v31_v8  ;;  %v42_v16 = vand.u32 2147483647, %v31_v8 }
  0x14   :  { %90 = vrcp.f32 %v32_v9  ;;  %v58_v17 = vand.u32 2147483648, %v32_v9  ;;  %vm52_vm2 = vweird.f32 %v32_v9  ;;  %v56_v19 = vand.u32 2147483647, %v32_v9 }
  0x15   :  { %v45_v21 = vor.u32 1.1754944e-38, %v44_v13  ;;  %vm43_vm5 = vcmp.eq.f32.partialorder %v42_v16, 8.507059e+37 }
  0x16   :  { %v59_v24 = vor.u32 1.1754944e-38, %v58_v17  ;;  %vm57_vm7 = vcmp.eq.f32.partialorder %v56_v19, 8.507059e+37 }
  0x19   :  { %v89_v10 = vpop.eup %88 }
  0x1a   :  { %v91_v11 = vpop.eup %90  ;;  %v34_v12 = vmul.f32 %v89_v10, %v31_v8  ;;  %vm39_vm1 = vweird.f32 %v89_v10 }
  0x1b   :  { %v48_v14 = vmul.f32 %v91_v11, %v32_v9  ;;  %vm53_vm3 = vweird.f32 %v91_v11  ;;  %vm40_vm4 = vmor %vm38_vm0, %vm39_vm1 }
  0x1c   :  { %v35_v15 = vsub.f32 1.0, %v34_v12  ;;  %vm54_vm6 = vmor %vm52_vm2, %vm53_vm3 }
  0x1d   :  { %v49_v18 = vsub.f32 1.0, %v48_v14 }
  0x1e   :  { %v36_v20 = vmul.f32 %v89_v10, %v35_v15 }
  0x1f   :  { %v50_v22 = vmul.f32 %v91_v11, %v49_v18 }
  0x20   :  { %v37_v23 = vadd.f32 %v89_v10, %v36_v20 }
  0x21   :  { %v51_v25 = vadd.f32 %v91_v11, %v50_v22 }
  0x22   :  { %v41_v26 = vsel %vm40_vm4, %v89_v10, %v37_v23 }
  0x23   :  { %v46_v27 = vsel %vm43_vm5, %v45_v21, %v41_v26  ;;  %v55_v28 = vsel %vm54_vm6, %v91_v11, %v51_v25 }
  0x24   :  { %v61_v29 = vmul.f32 %v46_v27, %v23_v0  ;;  %v60_v30 = vsel %vm57_vm7, %v59_v24, %v55_v28 }
  0x25   :  { %v62_v31 = vmul.f32 %v60_v30, %v24_v1 }
  0x26   :  { %63 = vst [vmem:[#allocation5] sm:$0xff] %v61_v29 }
  0x27   :  { %64 = vst [vmem:[#allocation5 + $0x8] sm:$0xff] %v62_v31 }
  0x28   :  { %75 = dma.vmem_to_hbm [thread:$0]  %s71_s11, 256, %s73_s14, [#allocation4]  }
  0x29   :  { %142 = dma.done.wait [#allocation4], 256  }
  0x2a   :  { %143 = vsyncadd [#allocation4], 4294967040 }
  0x2b   :  { %80 = vsyncpa [#allocation3], 1 }
  0x2c   :  { %81 = vsyncpa [#allocation4], 1 }

</bundles_post_ra>
